<compile_context>
chip_gen: v5e
topology: v5e:2x2
jax: 0.10.0
libtpu: 0.0.40
codegen_flags: <defaults>
</compile_context>

<pallas_src>
import functools

import jax
import jax.numpy as jnp
from jax import lax
from jax.experimental import pallas as pl
from jax.experimental.pallas import tpu as pltpu


_MM_CHUNK = 8      # batch rows per batched mat-vec issued to the MXU
_MAX_TB = 1024     # cap on the batch tile (bounds scratch size / step latency)

_MXU_OK = True     # flipped to False once if Mosaic rejects the batched mat-vec


def _round_up(x, m):
    return ((x + m - 1) // m) * m


@functools.lru_cache(maxsize=None)
def _tpu_params():
    """(num_core_splits, vmem_limit_bytes) for the current TPU backend."""
    vmem_cap = 64 * 1024 * 1024
    try:
        vmem_cap = int(pltpu.get_tpu_info().vmem_capacity_bytes)
    except Exception:
        pass
    kind = ""
    try:
        kind = jax.devices()[0].device_kind.lower()
    except Exception:
        pass
    # A size-2 "parallel" grid axis only buys anything on 2-TC (v7x-class)
    # parts; on single-TC v5e/v6e it just doubles worst-case padding.
    splits = 2 if "v7" in kind else 1
    vmem_limit = min(3 * vmem_cap // 4, 96 * 1024 * 1024)
    if splits == 2:
        vmem_limit = min(vmem_limit, 40 * 1024 * 1024)   # 64 MiB per TC on v7x
    return splits, vmem_limit


def _choose_tiles(batch, d, dtype, splits, vmem_limit):
    """Pick (tb, nb): batch tile and tile count per core split."""
    itemsize = jnp.dtype(dtype).itemsize
    sublane = {4: 8, 2: 16, 1: 32}.get(itemsize, 8)          # dtype-aware padding
    r_row = _round_up(d, sublane) * _round_up(d, 128) * itemsize
    ht_row = 2 * _round_up(d, 128) * itemsize
    acc_row = _round_up(d, 128) * 4
    per_row = 2 * (r_row + ht_row) + acc_row                 # 2x: double buffered
    budget = int(vmem_limit * 0.7)
    tb_max = max(_MM_CHUNK,
                 min(_MAX_TB, (budget // per_row) // _MM_CHUNK * _MM_CHUNK))
    per_core = pl.cdiv(batch, splits)
    nb = pl.cdiv(per_core, tb_max)
    tb = _round_up(pl.cdiv(per_core, nb), _MM_CHUNK)
    nb = pl.cdiv(per_core, tb)        # re-balance: zero padding < tb rows/split
    return tb, nb


def _dura_kernel(h_ref, r_ref, t_ref, out_ref, acc_ref, *, use_mxu):
    i = pl.program_id(1)

    @pl.when(i == 0)
    def _init():
        acc_ref[...] = jnp.zeros_like(acc_ref)

    n_chunks = h_ref.shape[0] // _MM_CHUNK   # tb is a multiple of _MM_CHUNK

    def _chunk(c, carry):
        s = pl.multiple_of(c * _MM_CHUNK, _MM_CHUNK)
        hc = h_ref[pl.ds(s, _MM_CHUNK), :]          # (8, D)
        tc = t_ref[pl.ds(s, _MM_CHUNK), :]          # (8, D)
        rc = r_ref[pl.ds(s, _MM_CHUNK), :, :]       # (8, D, D)
        hf = hc.astype(jnp.float32)
        tf = tc.astype(jnp.float32)
        if use_mxu:
            # MXU batched mat-vecs (mirror torch.bmm(r^T, h) / torch.bmm(r, t));
            # keeps the per-r-vreg reductions off the XLU / ext slot.
            rth = jnp.einsum('bij,bi->bj', rc, hc,
                             preferred_element_type=jnp.float32)
            rt = jnp.einsum('bij,bj->bi', rc, tc,
                            preferred_element_type=jnp.float32)
        else:
            # Portable VPU/XLU fallback (previous, known-good formulation).
            rf = rc.astype(jnp.float32)
            rth = jnp.sum(rf * hf[:, :, None], axis=1)
            rt = jnp.sum(rf * tf[:, None, :], axis=2)
        # Elementwise partial sums only in the hot loop; full scalar reduce is
        # deferred to the epilogue (cheaper and better numerics).
        acc_ref[pl.ds(s, _MM_CHUNK), :] += (
            2.0 * (hf * hf + tf * tf) + 0.5 * (rth * rth + rt * rt))
        return carry

    lax.fori_loop(0, n_chunks, _chunk, 0)

    @pl.when(i == pl.num_programs(1) - 1)
    def _finalize():
        total = jnp.sum(acc_ref[...])
        # Lane-dense (1, 8, 128) output slab per core split; wrapper reads [:, 0, 0].
        out_ref[...] = jnp.broadcast_to(total, out_ref.shape).astype(out_ref.dtype)


@functools.partial(jax.jit,
                   static_argnames=("splits", "vmem_limit", "tb", "nb", "use_mxu"))
def _dura_norm_impl(h, r, t, *, splits, vmem_limit, tb, nb, use_mxu):
    b, d = h.shape
    padded = splits * nb * tb
    if padded != b:                      # zero rows contribute exactly 0
        pad = padded - b
        h = jnp.pad(h, ((0, pad), (0, 0)))
        t = jnp.pad(t, ((0, pad), (0, 0)))
        r = jnp.pad(r, ((0, pad), (0, 0), (0, 0)))

    itemsize = jnp.dtype(r.dtype).itemsize
    cost = pl.CostEstimate(
        flops=4 * padded * d * d + 8 * padded * d,
        transcendentals=0,
        bytes_accessed=(padded * d * d * itemsize
                        + 2 * padded * d * itemsize
                        + splits * 8 * 128 * 4),
    )

    out = pl.pallas_call(
        functools.partial(_dura_kernel, use_mxu=use_mxu),
        out_shape=jax.ShapeDtypeStruct((splits, 8, 128), jnp.float32),
        grid_spec=pltpu.PrefetchScalarGridSpec(
            num_scalar_prefetch=0,
            grid=(splits, nb),
            in_specs=[
                pl.BlockSpec((tb, d), lambda c, i: (c * nb + i, 0)),
                pl.BlockSpec((tb, d, d), lambda c, i: (c * nb + i, 0, 0)),
                pl.BlockSpec((tb, d), lambda c, i: (c * nb + i, 0)),
            ],
            out_specs=pl.BlockSpec((1, 8, 128), lambda c, i: (c, 0, 0)),
            scratch_shapes=[pltpu.VMEM((tb, d), jnp.float32)],
        ),
        compiler_params=pltpu.CompilerParams(
            dimension_semantics=("parallel", "arbitrary"),
            vmem_limit_bytes=vmem_limit,
        ),
        cost_estimate=cost,
    )(h, r, t)

    return jnp.sum(out[:, 0, 0])


def _dura_norm(h, r, t):
    """norm contribution of a single factor (unweighted, undivided)."""
    global _MXU_OK
    b, d = h.shape
    assert r.shape == (b, d, d) and t.shape == (b, d)
    splits, vmem_limit = _tpu_params()
    tb, nb = _choose_tiles(b, d, r.dtype, splits, vmem_limit)
    if _MXU_OK:
        try:
            return _dura_norm_impl(h, r, t, splits=splits, vmem_limit=vmem_limit,
                                   tb=tb, nb=nb, use_mxu=True)
        except Exception:
            # This Mosaic build cannot lower the batched mat-vec dot_general;
            # fall back (once, globally) to the VPU/XLU reduction kernel.
            _MXU_OK = False
    return _dura_norm_impl(h, r, t, splits=splits, vmem_limit=vmem_limit,
                           tb=tb, nb=nb, use_mxu=False)


def dura_rescal_w(factors, weight):
    """factors: sequence of (h, r, t) with h, t: (B, D), r: (B, D, D)."""
    norm = jnp.zeros((), jnp.float32)
    for h, r, t in factors:           # one pallas_call per factor (no concat copy)
        norm = norm + _dura_norm(h, r, t)
    # PyTorch module divides by the *last* factor's batch size (loop-trailing h).
    return weight * norm / factors[-1][0].shape[0]


def _reference(factors, weight):
    norm = jnp.float32(0.0)
    for h, r, t in factors:
        norm = norm + 2.0 * jnp.sum(h ** 2 + t ** 2)
        rth = jnp.einsum("bij,bi->bj", r, h)
        rt = jnp.einsum("bij,bj->bi", r, t)
        norm = norm + 0.5 * (jnp.sum(rth ** 2) + jnp.sum(rt ** 2))
    return weight * norm / factors[-1][0].shape[0]


if __name__ == "__main__":
    key = jax.random.PRNGKey(0)
    B, D = 16, 32
    weight = 0.1

    def q(x):
        # Make inputs exactly bf16-representable so MXU-accumulated products in
        # the kernel and the XLA reference agree to accumulation-order noise.
        return x.astype(jnp.bfloat16).astype(jnp.float32)

    ks = jax.random.split(key, 6)
    factors = [
        (
            q(jax.random.normal(ks[0], (B, D), jnp.float32)),
            q(jax.random.normal(ks[1], (B, D, D), jnp.float32)),
            q(jax.random.normal(ks[2], (B, D), jnp.float32)),
        ),
        (
            q(jax.random.normal(ks[3], (B, D), jnp.float32)),
            q(jax.random.normal(ks[4], (B, D, D), jnp.float32)),
            q(jax.random.normal(ks[5], (B, D), jnp.float32)),
        ),
    ]

    out = jax.block_until_ready(dura_rescal_w(factors, weight))
    ref = jax.block_until_ready(_reference(factors, weight))
    assert jnp.allclose(out, ref, rtol=1e-3, atol=1e-2), (out, ref)
    print("KERNEL_OK")
</pallas_src>

<mosaic_0001>
module attributes {stable_mosaic.version = 11 : i64} {
  func.func @_dura_kernel(%arg0: i32, %arg1: i32, %arg2: memref<16x32xf32, #tpu.memory_space<vmem>>, %arg3: memref<16x32x32xf32, #tpu.memory_space<vmem>>, %arg4: memref<16x32xf32, #tpu.memory_space<vmem>>, %arg5: memref<1x8x128xf32, #tpu.memory_space<vmem>>, %arg6: memref<16x32xf32, #tpu.memory_space<vmem>>) attributes {dimension_semantics = [#tpu.dimension_semantics<parallel>, #tpu.dimension_semantics<arbitrary>], iteration_bounds = array<i64: 1, 1>, scalar_prefetch = 0 : i64, scratch_operands = 1 : i64, tpu.core_type = #tpu.core_type<tc>, window_params = [{transform_indices = @transform_0, window_bounds = array<i64: 16, 32>}, {transform_indices = @transform_1, window_bounds = array<i64: 16, 32, 32>}, {transform_indices = @transform_2, window_bounds = array<i64: 16, 32>}, {transform_indices = @transform_3, window_bounds = array<i64: 1, 8, 128>}]} {
    %c0_i32 = arith.constant 0 : i32
    %0 = arith.cmpi eq, %arg1, %c0_i32 : i32
    %1 = arith.extui %0 : i1 to i32
    %c0_i32_0 = arith.constant 0 : i32
    %2 = arith.cmpi ne, %1, %c0_i32_0 : i32
    scf.if %2 {
      %cst = arith.constant 0.000000e+00 : f32
      %7 = vector.broadcast %cst : f32 to vector<16x32xf32>
      %c0 = arith.constant 0 : index
      %c0_5 = arith.constant 0 : index
      %8 = vector.load %arg6[%c0, %c0_5] : memref<16x32xf32, #tpu.memory_space<vmem>>, vector<16x32xf32>
      tpu.vector_store %arg6[%c0, %c0_5], %7 {strides = array<i32>} : memref<16x32xf32, #tpu.memory_space<vmem>>, vector<16x32xf32>,
    } else {
    }
    %c0_i32_1 = arith.constant 0 : i32
    %c2_i32 = arith.constant 2 : i32
    %3 = arith.addi %c0_i32_1, %c2_i32 : i32
    %c1_i32 = arith.constant 1 : i32
    scf.for %arg7 = %c0_i32_1 to %3 step %c1_i32  : i32 {
      %c8_i32 = arith.constant 8 : i32
      %7 = arith.muli %arg7, %c8_i32 : i32
      %8 = tpu.assume_multiple %7, 8 : i32
      %9 = arith.index_cast %8 : i32 to index
      %c0 = arith.constant 0 : index
      %10 = vector.load %arg2[%9, %c0] : memref<16x32xf32, #tpu.memory_space<vmem>>, vector<8x32xf32>
      %11 = arith.index_cast %8 : i32 to index
      %c0_5 = arith.constant 0 : index
      %12 = vector.load %arg4[%11, %c0_5] : memref<16x32xf32, #tpu.memory_space<vmem>>, vector<8x32xf32>
      %13 = arith.index_cast %8 : i32 to index
      %c0_6 = arith.constant 0 : index
      %c0_7 = arith.constant 0 : index
      %14 = vector.load %arg3[%13, %c0_6, %c0_7] : memref<16x32x32xf32, #tpu.memory_space<vmem>>, vector<8x32x32xf32>
      "tpu.trace_start"() <{level = 10 : i32, message = "bij,bi->bj"}> : () -> ()
      %cst = arith.constant dense<0.000000e+00> : vector<8x32xf32>
      %15 = tpu.matmul %14, %10, %cst {dimension_numbers = #tpu.dot_dimension_numbers<[1], [1], [2], [], [0, 0, 0, 2], [0], [0]>} : vector<8x32x32xf32>, vector<8x32xf32>, vector<8x32xf32> -> vector<8x32xf32>
      "tpu.trace_stop"() : () -> ()
      "tpu.trace_start"() <{level = 10 : i32, message = "bij,bj->bi"}> : () -> ()
      %cst_8 = arith.constant dense<0.000000e+00> : vector<8x32xf32>
      %16 = tpu.matmul %14, %12, %cst_8 {dimension_numbers = #tpu.dot_dimension_numbers<[2], [1], [1], [], [0, 0, 0, 1], [0], [0]>} : vector<8x32x32xf32>, vector<8x32xf32>, vector<8x32xf32> -> vector<8x32xf32>
      "tpu.trace_stop"() : () -> ()
      %17 = arith.index_cast %8 : i32 to index
      %c0_9 = arith.constant 0 : index
      %18 = vector.load %arg6[%17, %c0_9] : memref<16x32xf32, #tpu.memory_space<vmem>>, vector<8x32xf32>
      %19 = arith.mulf %10, %10 : vector<8x32xf32>
      %20 = arith.mulf %12, %12 : vector<8x32xf32>
      %21 = arith.addf %19, %20 : vector<8x32xf32>
      %cst_10 = arith.constant 2.000000e+00 : f32
      %22 = vector.broadcast %cst_10 : f32 to vector<8x32xf32>
      %23 = arith.mulf %22, %21 : vector<8x32xf32>
      %24 = arith.mulf %15, %15 : vector<8x32xf32>
      %25 = arith.mulf %16, %16 : vector<8x32xf32>
      %26 = arith.addf %24, %25 : vector<8x32xf32>
      %cst_11 = arith.constant 5.000000e-01 : f32
      %27 = vector.broadcast %cst_11 : f32 to vector<8x32xf32>
      %28 = arith.mulf %27, %26 : vector<8x32xf32>
      %29 = arith.addf %23, %28 : vector<8x32xf32>
      %30 = arith.addf %18, %29 : vector<8x32xf32>
      %31 = arith.index_cast %8 : i32 to index
      %c0_12 = arith.constant 0 : index
      %32 = vector.load %arg6[%31, %c0_12] : memref<16x32xf32, #tpu.memory_space<vmem>>, vector<8x32xf32>
      tpu.vector_store %arg6[%31, %c0_12], %30 {strides = array<i32>} : memref<16x32xf32, #tpu.memory_space<vmem>>, vector<8x32xf32>,
    }
    %c2_i32_2 = arith.constant 2 : i32
    %c0_i32_3 = arith.constant 0 : i32
    %4 = arith.cmpi eq, %arg1, %c0_i32_3 : i32
    %5 = arith.extui %4 : i1 to i32
    %c0_i32_4 = arith.constant 0 : i32
    %6 = arith.cmpi ne, %5, %c0_i32_4 : i32
    scf.if %6 {
      %c0 = arith.constant 0 : index
      %c0_5 = arith.constant 0 : index
      %7 = vector.load %arg6[%c0, %c0_5] : memref<16x32xf32, #tpu.memory_space<vmem>>, vector<16x32xf32>
      %8 = vector.shape_cast %7 : vector<16x32xf32> to vector<1x16x32xf32>
      %cst = arith.constant dense<0.000000e+00> : vector<1xf32>
      %9 = vector.multi_reduction <add>, %8, %cst [1, 2] : vector<1x16x32xf32> to vector<1xf32>
      %10 = vector.shape_cast %9 : vector<1xf32> to vector<1x1x1xf32>
      %11 = vector.extract %10[0, 0, 0] : f32 from vector<1x1x1xf32>
      %12 = vector.broadcast %11 : f32 to vector<1x8x128xf32>
      %c0_6 = arith.constant 0 : index
      %c0_7 = arith.constant 0 : index
      %c0_8 = arith.constant 0 : index
      %13 = vector.load %arg5[%c0_6, %c0_7, %c0_8] : memref<1x8x128xf32, #tpu.memory_space<vmem>>, vector<1x8x128xf32>
      tpu.vector_store %arg5[%c0_6, %c0_7, %c0_8], %12 {strides = array<i32>} : memref<1x8x128xf32, #tpu.memory_space<vmem>>, vector<1x8x128xf32>,
    } else {
    }
    return
  }
  func.func @transform_0(%arg0: i32, %arg1: i32) -> (i32, i32) {
    %c1_i32 = arith.constant 1 : i32
    %0 = arith.muli %arg0, %c1_i32 : i32
    %1 = arith.addi %0, %arg1 : i32
    %c0_i32 = arith.constant 0 : i32
    %c0_i32_0 = arith.constant 0 : i32
    return %1, %c0_i32 : i32, i32
  }
  func.func @transform_1(%arg0: i32, %arg1: i32) -> (i32, i32, i32) {
    %c1_i32 = arith.constant 1 : i32
    %0 = arith.muli %arg0, %c1_i32 : i32
    %1 = arith.addi %0, %arg1 : i32
    %c0_i32 = arith.constant 0 : i32
    %c0_i32_0 = arith.constant 0 : i32
    %c0_i32_1 = arith.constant 0 : i32
    return %1, %c0_i32, %c0_i32_0 : i32, i32, i32
  }
  func.func @transform_2(%arg0: i32, %arg1: i32) -> (i32, i32) {
    %c1_i32 = arith.constant 1 : i32
    %0 = arith.muli %arg0, %c1_i32 : i32
    %1 = arith.addi %0, %arg1 : i32
    %c0_i32 = arith.constant 0 : i32
    %c0_i32_0 = arith.constant 0 : i32
    return %1, %c0_i32 : i32, i32
  }
  func.func @transform_3(%arg0: i32, %arg1: i32) -> (i32, i32, i32) {
    %c0_i32 = arith.constant 0 : i32
    %c0_i32_0 = arith.constant 0 : i32
    %c0_i32_1 = arith.constant 0 : i32
    return %arg0, %c0_i32, %c0_i32_0 : i32, i32, i32
  }
}

module attributes {stable_mosaic.version = 11 : i64} {
  func.func @_dura_kernel(%arg0: i32, %arg1: i32, %arg2: memref<16x32xf32, #tpu.memory_space<vmem>>, %arg3: memref<16x32x32xf32, #tpu.memory_space<vmem>>, %arg4: memref<16x32xf32, #tpu.memory_space<vmem>>, %arg5: memref<1x8x128xf32, #tpu.memory_space<vmem>>, %arg6: memref<16x32xf32, #tpu.memory_space<vmem>>) attributes {dimension_semantics = [#tpu.dimension_semantics<parallel>, #tpu.dimension_semantics<arbitrary>], iteration_bounds = array<i64: 1, 1>, scalar_prefetch = 0 : i64, scratch_operands = 1 : i64, tpu.core_type = #tpu.core_type<tc>, window_params = [{transform_indices = @transform_0, window_bounds = array<i64: 16, 32>}, {transform_indices = @transform_1, window_bounds = array<i64: 16, 32, 32>}, {transform_indices = @transform_2, window_bounds = array<i64: 16, 32>}, {transform_indices = @transform_3, window_bounds = array<i64: 1, 8, 128>}]} {
    %c0_i32 = arith.constant 0 : i32
    %0 = arith.cmpi eq, %arg1, %c0_i32 : i32
    %1 = arith.extui %0 : i1 to i32
    %c0_i32_0 = arith.constant 0 : i32
    %2 = arith.cmpi ne, %1, %c0_i32_0 : i32
    scf.if %2 {
      %cst = arith.constant 0.000000e+00 : f32
      %7 = vector.broadcast %cst : f32 to vector<16x32xf32>
      %c0 = arith.constant 0 : index
      %c0_5 = arith.constant 0 : index
      %8 = vector.load %arg6[%c0, %c0_5] : memref<16x32xf32, #tpu.memory_space<vmem>>, vector<16x32xf32>
      tpu.vector_store %arg6[%c0, %c0_5], %7 {strides = array<i32>} : memref<16x32xf32, #tpu.memory_space<vmem>>, vector<16x32xf32>,
    } else {
    }
    %c0_i32_1 = arith.constant 0 : i32
    %c2_i32 = arith.constant 2 : i32
    %3 = arith.addi %c0_i32_1, %c2_i32 : i32
    %c1_i32 = arith.constant 1 : i32
    scf.for %arg7 = %c0_i32_1 to %3 step %c1_i32  : i32 {
      %c8_i32 = arith.constant 8 : i32
      %7 = arith.muli %arg7, %c8_i32 : i32
      %8 = tpu.assume_multiple %7, 8 : i32
      %9 = arith.index_cast %8 : i32 to index
      %c0 = arith.constant 0 : index
      %10 = vector.load %arg2[%9, %c0] : memref<16x32xf32, #tpu.memory_space<vmem>>, vector<8x32xf32>
      %11 = arith.index_cast %8 : i32 to index
      %c0_5 = arith.constant 0 : index
      %12 = vector.load %arg4[%11, %c0_5] : memref<16x32xf32, #tpu.memory_space<vmem>>, vector<8x32xf32>
      %13 = arith.index_cast %8 : i32 to index
      %c0_6 = arith.constant 0 : index
      %c0_7 = arith.constant 0 : index
      %14 = vector.load %arg3[%13, %c0_6, %c0_7] : memref<16x32x32xf32, #tpu.memory_space<vmem>>, vector<8x32x32xf32>
      %15 = vector.shape_cast %10 : vector<8x32xf32> to vector<8x32x1xf32>
      %16 = vector.broadcast %15 : vector<8x32x1xf32> to vector<8x32x32xf32>
      %17 = arith.mulf %14, %16 : vector<8x32x32xf32>
      %cst = arith.constant dense<0.000000e+00> : vector<8x32xf32>
      %18 = vector.multi_reduction <add>, %17, %cst [1] : vector<8x32x32xf32> to vector<8x32xf32>
      %19 = vector.shape_cast %12 : vector<8x32xf32> to vector<8x1x32xf32>
      %20 = vector.broadcast %19 : vector<8x1x32xf32> to vector<8x32x32xf32>
      %21 = arith.mulf %14, %20 : vector<8x32x32xf32>
      %cst_8 = arith.constant dense<0.000000e+00> : vector<8x32xf32>
      %22 = vector.multi_reduction <add>, %21, %cst_8 [2] : vector<8x32x32xf32> to vector<8x32xf32>
      %23 = arith.index_cast %8 : i32 to index
      %c0_9 = arith.constant 0 : index
      %24 = vector.load %arg6[%23, %c0_9] : memref<16x32xf32, #tpu.memory_space<vmem>>, vector<8x32xf32>
      %25 = arith.mulf %10, %10 : vector<8x32xf32>
      %26 = arith.mulf %12, %12 : vector<8x32xf32>
      %27 = arith.addf %25, %26 : vector<8x32xf32>
      %cst_10 = arith.constant 2.000000e+00 : f32
      %28 = vector.broadcast %cst_10 : f32 to vector<8x32xf32>
      %29 = arith.mulf %28, %27 : vector<8x32xf32>
      %30 = arith.mulf %18, %18 : vector<8x32xf32>
      %31 = arith.mulf %22, %22 : vector<8x32xf32>
      %32 = arith.addf %30, %31 : vector<8x32xf32>
      %cst_11 = arith.constant 5.000000e-01 : f32
      %33 = vector.broadcast %cst_11 : f32 to vector<8x32xf32>
      %34 = arith.mulf %33, %32 : vector<8x32xf32>
      %35 = arith.addf %29, %34 : vector<8x32xf32>
      %36 = arith.addf %24, %35 : vector<8x32xf32>
      %37 = arith.index_cast %8 : i32 to index
      %c0_12 = arith.constant 0 : index
      %38 = vector.load %arg6[%37, %c0_12] : memref<16x32xf32, #tpu.memory_space<vmem>>, vector<8x32xf32>
      tpu.vector_store %arg6[%37, %c0_12], %36 {strides = array<i32>} : memref<16x32xf32, #tpu.memory_space<vmem>>, vector<8x32xf32>,
    }
    %c2_i32_2 = arith.constant 2 : i32
    %c0_i32_3 = arith.constant 0 : i32
    %4 = arith.cmpi eq, %arg1, %c0_i32_3 : i32
    %5 = arith.extui %4 : i1 to i32
    %c0_i32_4 = arith.constant 0 : i32
    %6 = arith.cmpi ne, %5, %c0_i32_4 : i32
    scf.if %6 {
      %c0 = arith.constant 0 : index
      %c0_5 = arith.constant 0 : index
      %7 = vector.load %arg6[%c0, %c0_5] : memref<16x32xf32, #tpu.memory_space<vmem>>, vector<16x32xf32>
      %8 = vector.shape_cast %7 : vector<16x32xf32> to vector<1x16x32xf32>
      %cst = arith.constant dense<0.000000e+00> : vector<1xf32>
      %9 = vector.multi_reduction <add>, %8, %cst [1, 2] : vector<1x16x32xf32> to vector<1xf32>
      %10 = vector.shape_cast %9 : vector<1xf32> to vector<1x1x1xf32>
      %11 = vector.extract %10[0, 0, 0] : f32 from vector<1x1x1xf32>
      %12 = vector.broadcast %11 : f32 to vector<1x8x128xf32>
      %c0_6 = arith.constant 0 : index
      %c0_7 = arith.constant 0 : index
      %c0_8 = arith.constant 0 : index
      %13 = vector.load %arg5[%c0_6, %c0_7, %c0_8] : memref<1x8x128xf32, #tpu.memory_space<vmem>>, vector<1x8x128xf32>
      tpu.vector_store %arg5[%c0_6, %c0_7, %c0_8], %12 {strides = array<i32>} : memref<1x8x128xf32, #tpu.memory_space<vmem>>, vector<1x8x128xf32>,
    } else {
    }
    return
  }
  func.func @transform_0(%arg0: i32, %arg1: i32) -> (i32, i32) {
    %c1_i32 = arith.constant 1 : i32
    %0 = arith.muli %arg0, %c1_i32 : i32
    %1 = arith.addi %0, %arg1 : i32
    %c0_i32 = arith.constant 0 : i32
    %c0_i32_0 = arith.constant 0 : i32
    return %1, %c0_i32 : i32, i32
  }
  func.func @transform_1(%arg0: i32, %arg1: i32) -> (i32, i32, i32) {
    %c1_i32 = arith.constant 1 : i32
    %0 = arith.muli %arg0, %c1_i32 : i32
    %1 = arith.addi %0, %arg1 : i32
    %c0_i32 = arith.constant 0 : i32
    %c0_i32_0 = arith.constant 0 : i32
    %c0_i32_1 = arith.constant 0 : i32
    return %1, %c0_i32, %c0_i32_0 : i32, i32, i32
  }
  func.func @transform_2(%arg0: i32, %arg1: i32) -> (i32, i32) {
    %c1_i32 = arith.constant 1 : i32
    %0 = arith.muli %arg0, %c1_i32 : i32
    %1 = arith.addi %0, %arg1 : i32
    %c0_i32 = arith.constant 0 : i32
    %c0_i32_0 = arith.constant 0 : i32
    return %1, %c0_i32 : i32, i32
  }
  func.func @transform_3(%arg0: i32, %arg1: i32) -> (i32, i32, i32) {
    %c0_i32 = arith.constant 0 : i32
    %c0_i32_0 = arith.constant 0 : i32
    %c0_i32_1 = arith.constant 0 : i32
    return %arg0, %c0_i32, %c0_i32_0 : i32, i32, i32
  }
}

</mosaic_0001>

<bundles_post_ra>
// kernel: _dura_norm_impl.1
= control target key start
LH: loop header
LB: loop body
LE: loop exit
PB: predicated region body
PF: predicated region fallthrough
CT: control target
= control target key end

     0   :  { %8 = vsyncpa [#allocation4], 0  ;;  %s1451_s0 = inlined_call_operand.hbm [shape: f32[16,32], index: 0, kind: input, shape index: {}]   ;;  %s1452_s1 = inlined_call_operand.hbm [shape: f32[16,32,32], index: 1, kind: input, shape index: {}]   ;;  %s1453_s2 = inlined_call_operand.hbm [shape: f32[16,32], index: 2, kind: input, shape index: {}]   ;;  %s1454_s3 = inlined_call_operand.vmem [shape: f32[1,8,128], index: 3, kind: output, shape index: {}]  }
   0x1   :  { %9 = vsyncpa [#allocation6], 0  ;;  %s36_s14 = sshll.u32 %s1452_s1, 4  ;;  %s993_s15 = smov [#allocation5]   ;;  %s37_s14 = int_to_ptr.hbm [resolvable:$true] %s36_s14 }
   0x2   :  { %s38_s16 = sshll.u32 %s993_s15, 4  ;;  %s18_s19 = sshll.u32 %s1451_s0, 4  ;;  %s39_s16 = int_to_ptr.vmem [resolvable:$true] %s38_s16  ;;  %s19_s19 = int_to_ptr.hbm [resolvable:$true] %s18_s19 }
   0x3   :  { %s994_s20 = smov 128   ;;  %s995_s21 = smov 8  }
   0x4   :  { %44 = dma.hbm_to_vmem [thread:$0]  %s37_s14, 8192, %s39_s16, [#allocation6], %s994_s20, %s994_s20, %s995_s21  }
   0x5   :  { %s996_s22 = smov [#allocation3]   ;;  %s53_s26 = sshll.u32 %s1453_s2, 4  ;;  %s54_s26 = int_to_ptr.hbm [resolvable:$true] %s53_s26 }
   0x6   :  { %s20_s23 = sshll.u32 %s996_s22, 4  ;;  %s997_s1 = smov [#allocation7]   ;;  %s21_s23 = int_to_ptr.vmem [resolvable:$true] %s20_s23 }
   0x7   :  { %26 = dma.hbm_to_vmem [thread:$0]  %s19_s19, 256, %s21_s23, [#allocation4], %s994_s20, %s994_s20, %s995_s21  }
   0x8   :  { %s55_s27 = sshll.u32 %s997_s1, 4  ;;  %s56_s27 = int_to_ptr.vmem [resolvable:$true] %s55_s27 }
   0x9   :  { %61 = dma.hbm_to_vmem [thread:$0]  %s54_s26, 256, %s56_s27, [#allocation6], %s994_s20, %s994_s20, %s995_s21  }
   0xa   :  { %985 = dma.done.wait [#allocation4], 256  }
   0xb   :  { %986 = vsyncadd [#allocation4], 4294967040 }
   0xc   :  { %987 = dma.done.wait [#allocation6], 8448  }
   0xd   :  { %988 = vsyncadd [#allocation6], 4294958848  ;;  %vm84_vm0 = vcmask 261120   ;;  %v998_v0 = vmov 0.0   ;;  %s1030_s0 = smov 0  }
   0xe   :  { %85 = vst.msk [vmem:[#allocation2] sm:$0xff] %vm84_vm0, %v998_v0 }
   0xf   :  { %86 = vst.msk [vmem:[#allocation2 + $0x8] sm:$0xff] %vm84_vm0, %v998_v0 }
  0x10 LB: > { %v133_v1 = vlaneseq  ;;  %s1039_s2 = sshll.u32 %s991_s0, 3  ;;  %s861_s29 = sshll.u32 %s991_s0, 8  ;;  %vm704_vm1 = vcmask 130112   ;;  %vm708_vm2 = vcmask 195712   ;;  %vm712_vm3 = vcmask 261312   ;;  %s991_s0 = sphi %s1030_s0, %s92_s0  }
  0x11   : > { %s94_s28 = scalar_lea.vmem [#allocation3], %s1039_s2  ;;  %s1080_s30 = scalar_lea.vmem [#allocation5], %s861_s29  ;;  %vm796_vm4 = vcmask 1041409   ;;  %vm799_vm5 = vcmask 1042434   ;;  %vm802_vm6 = vcmask 1043459   ;;  %vm805_vm7 = vcmask 1044484  }
  0x12   : > { %v1036_v2 = vshrl.u32 %v133_v1, 7  ;;  %v1051_v5 = vld [vmem:[%s94_s28] sm:$0xff]  ;;  %v1087_v15 = vld [vmem:[%s1080_s30 + $0x28] sm:$0xff]  ;;  %v1097_v23 = vld [vmem:[%s1080_s30 + $0x18] sm:$0xff]  ;;  %s96_s4 = scalar_lea.vmem [#allocation7], %s1039_s2  ;;  %vm808_vm8 = vcmask 1045509  }
  0x13   : > { %v157_v6 = vperm.slane %v1051_v5, 1  ;;  %v132_v7 = vperm.slane %v1051_v5, 0  ;;  %v207_v9 = vperm.slane %v1051_v5, 3  ;;  %v232_v10 = vperm.slane %v1051_v5, 4  ;;  %v1083_v14 = vld [vmem:[%s1080_s30 + $0x20] sm:$0xff]  ;;  %v1108_v31 = vld [vmem:[%s1080_s30 + $0x38] sm:$0xff] }
  0x14   : > { %879 = vset.pattern.permute.xlu2 %v1036_v2  ;;  %v1043_v3 = vadd.s32 16, %v1036_v2  ;;  %v1046_v4 = vadd.s32 8, %v1036_v2  ;;  %v1058_v8 = vadd.s32 24, %v1036_v2  ;;  %v257_v11 = vperm.slane %v1051_v5, 5  ;;  %v1111_v33 = vld [vmem:[%s1080_s30 + $0x30] sm:$0xff]  ;;  %v1114_v35 = vld [vmem:[%s1080_s30 + $0x68] sm:$0xff] }
  0x15   : > { %v182_v12 = vperm.slane %v1051_v5, 2  ;;  %v282_v28 = vperm.slane %v1051_v5, 6  ;;  %v1104_v30 = vperm.slane %v1051_v5, 7  ;;  %v1124_v42 = vld [vmem:[%s1080_s30 + $0x60] sm:$0xff]  ;;  %v1137_v50 = vld [vmem:[%s1080_s30 + $0x48] sm:$0xff]  ;;  %v1145_v55 = vld [vmem:[%s1080_s30 + $0x78] sm:$0xff] }
  0x16   : > { %880 = vset.pattern.permute.xlu1 %v1043_v3  ;;  %878 = vset.pattern.permute.xlu0 %v1046_v4  ;;  %v101_v54 = vld [vmem:[%s1080_s30 + $0x8] sm:$0xff]  ;;  %v1148_v57 = vld [vmem:[%s1080_s30 + $0x10] sm:$0xff]  ;;  %v1152_v58 = vld [vmem:[%s1080_s30] sm:$0xff]  ;;  %vm811_vm9 = vcmask 1046534   ;;  %vm814_vm10 = vcmask 1047559   ;;  %s621_s5 = scalar_lea.vmem [#allocation2], %s1039_s2 }
  0x17   : > { %v1162_v5 = vld [vmem:[%s1080_s30 + $0x50] sm:$0xff]  ;;  %s92_s0 = sadd.s32 1, %s991_s0  }
  0x18   : > { %p89_p0 = scmp.ge.s32.totalorder %s92_s0, 2  }
  0x1c   : > { %162 = vperm.xlu2 %879, %v157_v6  }
  0x1e   : > { %149 = vperm.xlu1 %880, %v132_v7   ;;  %143 = vperm.xlu0 %878, %v132_v7  }
  0x24   : > { %882 = vset.pattern.permute.xlu2 %v1046_v4 }
  0x26   : > { %881 = vset.pattern.permute.xlu1 %v1058_v8  ;;  %218 = vperm.xlu0 %878, %v207_v9  }
  0x2c   : > { %168 = vperm.xlu2 %882, %v157_v6  }
  0x2e   : > { %155 = vperm.xlu1 %881, %v132_v7   ;;  %893 = vset.pattern.permute.xlu0 %v1043_v3 }
  0x34   : > { %884 = vset.pattern.permute.xlu2 %v1058_v8 }
  0x36   : > { %883 = vset.pattern.permute.xlu1 %v1043_v3  ;;  %249 = vperm.xlu0 %893, %v232_v10  }
  0x3c   : > { %180 = vperm.xlu2 %884, %v157_v6  }
  0x3e   : > { %174 = vperm.xlu1 %883, %v157_v6   ;;  %898 = vset.pattern.permute.xlu0 %v1058_v8 }
  0x44   : > { %886 = vset.pattern.permute.xlu2 %v1043_v3 }
  0x46   : > { %885 = vset.pattern.permute.xlu1 %v1046_v4  ;;  %280 = vperm.xlu0 %898, %v257_v11  }
  0x4c   : > { %199 = vperm.xlu2 %886, %v182_v12  }
  0x4e   : > { %193 = vperm.xlu1 %885, %v182_v12   ;;  %899 = vset.pattern.permute.xlu0 %v1036_v2 }
  0x54   : > { %888 = vset.pattern.permute.xlu2 %v1036_v2 }
  0x56   : > { %887 = vset.pattern.permute.xlu1 %v1058_v8  ;;  %137 = vperm.xlu0 %899, %v132_v7   ;;  %v111_v7 = vld [vmem:[%s1080_s30 + $0x58] sm:$0xff] }
  0x5c   : > { %212 = vperm.xlu2 %888, %v207_v9  }
  0x5e   : > { %205 = vperm.xlu1 %887, %v182_v12   ;;  %187 = vperm.xlu0 %899, %v182_v12  }
  0x64   : > { %890 = vset.pattern.permute.xlu2 %v1058_v8 }
  0x66   : > { %889 = vset.pattern.permute.xlu1 %v1043_v3  ;;  %312 = vperm.xlu0 %899, %v1104_v30  }
  0x6c   : > { %230 = vperm.xlu2 %890, %v207_v9  }
  0x6e   : > { %224 = vperm.xlu1 %889, %v207_v9   ;;  %907 = vset.pattern.permute.xlu0 %v1058_v8  ;;  %v108_v9 = vld [vmem:[%s1080_s30 + $0x40] sm:$0xff] }
  0x74   : > { %892 = vset.pattern.permute.xlu2 %v1046_v4 }
  0x76   : > { %891 = vset.pattern.permute.xlu1 %v1036_v2  ;;  %v163_v13 = vpop.permute.xlu2 %162 }
  0x77   : > { %v336_v16 = vmul.f32 %v163_v13, %v1083_v14 }
  0x79   : > { %v378_v19 = vsel %vm84_vm0, %v336_v16, 0.0  ;;  %v1171_v16 = vld [vmem:[%s96_s4] sm:$0xff] }
  0x7c   : > { %243 = vperm.xlu2 %892, %v232_v10  }
  0x7e   : > { %237 = vperm.xlu1 %891, %v232_v10  }
  0x84   : > { %895 = vset.pattern.permute.xlu2 %v1036_v2 }
  0x86   : > { %v169_v17 = vpop.permute.xlu2 %168  ;;  %894 = vset.pattern.permute.xlu1 %v1058_v8 }
  0x87   : > { %v337_v18 = vmul.f32 %v169_v17, %v1087_v15 }
  0x89   : > { %v379_v20 = vsel %vm84_vm0, %v337_v18, 0.0 }
  0x8a   : > { %v380_v21 = vadd.f32 %v379_v20, %v378_v19 }
  0x8c   : > { %262 = vperm.xlu2 %895, %v257_v11  }
  0x8e   : > { %255 = vperm.xlu1 %894, %v232_v10  }
  0x90   : > { %v150_v22 = vpop.permute.xlu1 %149  ;;  %v144_v25 = vpop.permute.xlu0 %143 }
  0x91   : > { %v333_v56 = vmul.f32 %v144_v25, %v101_v54  ;;  %v334_v62 = vmul.f32 %v150_v22, %v1148_v57  ;;  %v1177_v22 = vperm.slane %v1171_v16, 0  ;;  %v1180_v25 = vld [vmem:[%s1080_s30 + $0x88] sm:$0xff] }
  0x93   : > { %v366_v63 = vsel %vm84_vm0, %v333_v56, 0.0 }
  0x94   : > { %897 = vset.pattern.permute.xlu2 %v1043_v3 }
  0x96   : > { %896 = vset.pattern.permute.xlu1 %v1046_v4  ;;  %v181_v27 = vpop.permute.xlu2 %180 }
  0x97   : > { %v339_v36 = vmul.f32 %v181_v27, %v1108_v31  ;;  %v494_v27 = vmul.f32 %v1177_v22, %v101_v54 }
  0x98   : > { %v219_v29 = vpop.permute.xlu0 %218 }
  0x99   : > { %v345_v39 = vmul.f32 %v219_v29, %v1114_v35  ;;  %v383_v43 = vsel %vm84_vm0, %v339_v36, 0.0  ;;  %v528_v36 = vsel %vm84_vm0, %v494_v27, 0.0 }
  0x9a   : > { %529 = vadd.xlane.f32.xlu0 %v528_v36  ;;  %v495_v36 = vmul.f32 %v1177_v22, %v1148_v57 }
  0x9b   : > { %v405_v46 = vsel %vm84_vm0, %v345_v39, 0.0 }
  0x9c   : > { %274 = vperm.xlu2 %897, %v257_v11  }
  0x9e   : > { %268 = vperm.xlu1 %896, %v257_v11  }
  0xa0   : > { %v156_v24 = vpop.permute.xlu1 %155 }
  0xa1   : > { %v335_v26 = vmul.f32 %v156_v24, %v1097_v23 }
  0xa3   : > { %v370_v10 = vsel %vm84_vm0, %v335_v26, 0.0 }
  0xa4   : > { %901 = vset.pattern.permute.xlu2 %v1046_v4 }
  0xa6   : > { %900 = vset.pattern.permute.xlu1 %v1036_v2  ;;  %v200_v32 = vpop.permute.xlu2 %199 }
  0xa7   : > { %v342_v17 = vmul.f32 %v200_v32, %v1162_v5 }
  0xa8   : > { %v1121_v41 = vpop.permute.xlu0 %249 }
  0xa9   : > { %v394_v26 = vsel %vm84_vm0, %v342_v17, 0.0  ;;  %v1233_v17 = vld [vmem:[%s1080_s30 + $0xb0] sm:$0xff] }
  0xac   : > { %293 = vperm.xlu2 %901, %v282_v28  }
  0xae   : > { %287 = vperm.xlu1 %900, %v282_v28  }
  0xb0   : > { %v175_v34 = vpop.permute.xlu1 %174 }
  0xb1   : > { %v338_v37 = vmul.f32 %v175_v34, %v1111_v33 }
  0xb3   : > { %v381_v38 = vsel %vm84_vm0, %v338_v37, 0.0 }
  0xb4   : > { %v382_v40 = vadd.f32 %v381_v38, %v380_v21  ;;  %903 = vset.pattern.permute.xlu2 %v1058_v8  ;;  %v470_v38 = vrot.slane %v1171_v16, 1 }
  0xb6   : > { %v1128_v44 = vadd.f32 %v383_v43, %v382_v40  ;;  %902 = vset.pattern.permute.xlu1 %v1043_v3  ;;  %v213_v45 = vpop.permute.xlu2 %212  ;;  %v1191_v39 = vperm.slane %v470_v38, 0  ;;  %v114_v40 = vld [vmem:[%s1080_s30 + $0x70] sm:$0xff] }
  0xb7   : > { %v344_v47 = vmul.f32 %v213_v45, %v1124_v42 }
  0xb8   : > { %v1139_v51 = vpop.permute.xlu0 %280 }
  0xb9   : > { %v404_v48 = vsel %vm84_vm0, %v344_v47, 0.0 }
  0xba   : > { %v1134_v49 = vadd.f32 %v405_v46, %v404_v48  ;;  %v471_v48 = vrot.slane %v1171_v16, 2 }
  0xbc   : > { %305 = vperm.xlu2 %903, %v282_v28   ;;  %v1205_v54 = vperm.slane %v471_v48, 0 }
  0xbe   : > { %299 = vperm.xlu1 %902, %v282_v28  }
  0xc0   : > { %v194_v52 = vpop.permute.xlu1 %193 }
  0xc1   : > { %v341_v53 = vmul.f32 %v194_v52, %v1137_v50 }
  0xc3   : > { %v392_v20 = vsel %vm84_vm0, %v341_v53, 0.0  ;;  %v1202_v53 = vld [vmem:[%s1080_s30 + $0xa0] sm:$0xff] }
  0xc4   : > { %905 = vset.pattern.permute.xlu2 %v1043_v3 }
  0xc6   : > { %904 = vset.pattern.permute.xlu1 %v1046_v4  ;;  %v231_v59 = vpop.permute.xlu2 %230  ;;  %v368_v4 = vsel %vm84_vm0, %v334_v62, 0.0 }
  0xc7   : > { %v347_v60 = vmul.f32 %v231_v59, %v1145_v55 }
  0xc8   : > { %v138_v61 = vpop.permute.xlu0 %137 }
  0xc9   : > { %v332_v0 = vmul.f32 %v138_v61, %v1152_v58  ;;  %v501_v61 = vmul.f32 %v1205_v54, %v108_v9 }
  0xcb   : > { %v365_v2 = vsel %vm84_vm0, %v332_v0, 0.0  ;;  %v549_v62 = vsel %vm84_vm0, %v501_v61, 0.0 }
  0xcc   : > { %v367_v3 = vadd.f32 %v366_v63, %v365_v2  ;;  %324 = vperm.xlu2 %905, %v1104_v30   ;;  %v1215_v63 = vld [vmem:[%s1080_s30 + $0x90] sm:$0xff]  ;;  %v504_v2 = vmul.f32 %v1205_v54, %v111_v7 }
  0xcd   : > { %v350_v0 = vmul.f32 %v1121_v41, %v1215_v63 }
  0xce   : > { %v369_v6 = vadd.f32 %v368_v4, %v367_v3  ;;  %318 = vperm.xlu1 %904, %v1104_v30  }
  0xd0   : > { %v1168_v11 = vadd.f32 %v370_v10, %v369_v6  ;;  %v206_v12 = vpop.permute.xlu1 %205  ;;  %v188_v13 = vpop.permute.xlu0 %187  ;;  %v558_v6 = vsel %vm84_vm0, %v504_v2, 0.0  ;;  %v420_v10 = vsel %vm84_vm0, %v350_v0, 0.0  ;;  %v1279_v0 = vld [vmem:[%s1080_s30 + $0xb8] sm:$0xff]  ;;  %v503_v2 = vmul.f32 %v1205_v54, %v1162_v5 }
  0xd1   : > { %v343_v18 = vmul.f32 %v206_v12, %v111_v7  ;;  %v340_v19 = vmul.f32 %v188_v13, %v108_v9  ;;  %v472_v13 = vrot.slane %v1171_v16, 3 }
  0xd3   : > { %v391_v21 = vsel %vm84_vm0, %v340_v19, 0.0  ;;  %v396_v32 = vsel %vm84_vm0, %v343_v18, 0.0  ;;  %v1235_v7 = vperm.slane %v472_v13, 0  ;;  %v496_v19 = vmul.f32 %v1177_v22, %v1097_v23 }
  0xd4   : > { %v393_v24 = vadd.f32 %v392_v20, %v391_v21 }
  0xd5   : > { %v534_v27 = vsel %vm84_vm0, %v496_v19, 0.0  ;;  %v508_v23 = vmul.f32 %v1235_v7, %v1145_v55  ;;  %v531_v55 = vsel %vm84_vm0, %v495_v36, 0.0 }
  0xd6   : > { %v395_v28 = vadd.f32 %v394_v26, %v393_v24  ;;  %906 = vset.pattern.permute.xlu1 %v1058_v8  ;;  %v244_v29 = vpop.permute.xlu2 %243  ;;  %v498_v8 = vmul.f32 %v1191_v39, %v1087_v15  ;;  %v507_v24 = vmul.f32 %v1235_v7, %v114_v40 }
  0xd7   : > { %v349_v34 = vmul.f32 %v244_v29, %v1180_v25  ;;  %v497_v29 = vmul.f32 %v1191_v39, %v1083_v14  ;;  %v570_v38 = vsel %vm84_vm0, %v508_v23, 0.0 }
  0xd8   : > { %v1188_v37 = vadd.f32 %v396_v32, %v395_v28  ;;  %v540_v46 = vsel %vm84_vm0, %v498_v8, 0.0  ;;  %v567_v26 = vsel %vm84_vm0, %v507_v24, 0.0  ;;  %v1244_v28 = vld [vmem:[%s1080_s30 + $0x98] sm:$0xff]  ;;  %v473_v24 = vrot.slane %v1171_v16, 4 }
  0xd9   : > { %541 = vadd.xlane.f32.xlu0 %v540_v46  ;;  %v418_v12 = vsel %vm84_vm0, %v349_v34, 0.0 }
  0xde   : > { %330 = vperm.xlu1 %906, %v1104_v30   ;;  %v409_v30 = vsel %vm84_vm0, %v347_v60, 0.0  ;;  %v493_v60 = vmul.f32 %v1177_v22, %v1152_v58  ;;  %v500_v22 = vmul.f32 %v1191_v39, %v1108_v31 }
  0xe0   : > { %v225_v43 = vpop.permute.xlu1 %224  ;;  %v525_v9 = vsel %vm84_vm0, %v493_v60, 0.0  ;;  %v546_v61 = vsel %vm84_vm0, %v500_v22, 0.0 }
  0xe1   : > { %v346_v45 = vmul.f32 %v225_v43, %v114_v40  ;;  %550 = vadd.xlane.f32.xlu0 %v549_v62  ;;  %v537_v40 = vsel %vm84_vm0, %v497_v29, 0.0  ;;  %v474_v43 = vrot.slane %v1171_v16, 5  ;;  %v475_v62 = vrot.slane %v1171_v16, 6 }
  0xe3   : > { %v407_v47 = vsel %vm84_vm0, %v346_v45, 0.0  ;;  %v1260_v45 = vld [vmem:[%s1080_s30 + $0xc8] sm:$0xff]  ;;  %v1263_v46 = vperm.slane %v474_v43, 0  ;;  %v1276_v31 = vperm.slane %v475_v62, 0 }
  0xe4   : > { %v408_v52 = vadd.f32 %v407_v47, %v1134_v49  ;;  %v1218_v49 = vld [vmem:[%s1080_s30 + $0x80] sm:$0xff]  ;;  %v121_v47 = vld [vmem:[%s1080_s30 + $0xa8] sm:$0xff] }
  0xe6   : > { %v1207_v15 = vadd.f32 %v409_v30, %v408_v52  ;;  %v263_v56 = vpop.permute.xlu2 %262  ;;  %v514_v52 = vmul.f32 %v1263_v46, %v121_v47  ;;  %v499_v30 = vmul.f32 %v1191_v39, %v1111_v33 }
  0xe7   : > { %v1210_v59 = vmul.f32 %v263_v56, %v1202_v53 }
  0xe8   : > { %v588_v56 = vsel %vm84_vm0, %v514_v52, 0.0  ;;  %v543_v60 = vsel %vm84_vm0, %v499_v30, 0.0 }
  0xe9   : > { %559 = vadd.xlane.f32.xlu0 %v558_v6  ;;  %v430_v5 = vsel %vm84_vm0, %v1210_v59, 0.0 }
  0xf0   : > { %v238_v3 = vpop.permute.xlu1 %237 }
  0xf1   : > { %v348_v4 = vmul.f32 %v238_v3, %v1218_v49  ;;  %568 = vadd.xlane.f32.xlu0 %v567_v26  ;;  %v124_v3 = vld [vmem:[%s1080_s30 + $0xc0] sm:$0xff]  ;;  %v126_v26 = vld [vmem:[%s1080_s30 + $0xd0] sm:$0xff] }
  0xf2   : > { %v517_v33 = vmul.f32 %v1276_v31, %v124_v3 }
  0xf3   : > { %v417_v58 = vsel %vm84_vm0, %v348_v4, 0.0  ;;  %v355_v4 = vmul.f32 %v1139_v51, %v1279_v0 }
  0xf4   : > { %v419_v41 = vadd.f32 %v418_v12, %v417_v58  ;;  %v555_v12 = vsel %vm84_vm0, %v503_v2, 0.0 }
  0xf5   : > { %526 = vadd.xlane.f32.xlu2 %v525_v9  ;;  %v502_v9 = vmul.f32 %v1205_v54, %v1137_v50 }
  0xf6   : > { %v275_v18 = vpop.permute.xlu2 %274  ;;  %v421_v20 = vadd.f32 %v420_v10, %v419_v41  ;;  %v597_v10 = vsel %vm84_vm0, %v517_v33, 0.0  ;;  %v127_v41 = vld [vmem:[%s1080_s30 + $0xd8] sm:$0xff] }
  0xf7   : > { %v354_v21 = vmul.f32 %v275_v18, %v1233_v17  ;;  %v435_v18 = vsel %vm84_vm0, %v355_v4, 0.0  ;;  %v552_v50 = vsel %vm84_vm0, %v502_v9, 0.0  ;;  %v313_v9 = vpop.permute.xlu0 %312 }
  0xf9   : > { %571 = vadd.xlane.f32.xlu0 %v570_v38  ;;  %v433_v51 = vsel %vm84_vm0, %v354_v21, 0.0  ;;  %v505_v21 = vmul.f32 %v1235_v7, %v1124_v42  ;;  %v520_v38 = vmul.f32 %v1276_v31, %v127_v41 }
  0xfb   : > { %v606_v42 = vsel %vm84_vm0, %v520_v38, 0.0 }
  0xfd   : > { %535 = vadd.xlane.f32.xlu2 %v534_v27  ;;  %v519_v27 = vmul.f32 %v1276_v31, %v126_v26 }
  0xff   : > { %v603_v23 = vsel %vm84_vm0, %v519_v27, 0.0 }
 0x100   : > { %v256_v32 = vpop.permute.xlu1 %255 }
 0x101   : > { %v351_v34 = vmul.f32 %v256_v32, %v1244_v28  ;;  %589 = vadd.xlane.f32.xlu0 %v588_v56 }
 0x103   : > { %v422_v8 = vsel %vm84_vm0, %v351_v34, 0.0  ;;  %v481_v34 = vperm.slane %v473_v24, 0 }
 0x104   : > { %v1257_v14 = vadd.f32 %v422_v8, %v421_v20  ;;  %v506_v20 = vmul.f32 %v1235_v7, %v1114_v35  ;;  %v561_v35 = vsel %vm84_vm0, %v505_v21, 0.0  ;;  %v1349_v21 = vand.u32 127, %v133_v1 }
 0x105   : > { %538 = vadd.xlane.f32.xlu2 %v537_v40  ;;  %v510_v36 = vmul.f32 %v481_v34, %v1180_v25  ;;  %v509_v43 = vmul.f32 %v481_v34, %v1218_v49  ;;  %v511_v52 = vmul.f32 %v481_v34, %v1215_v63  ;;  %v512_v62 = vmul.f32 %v481_v34, %v1244_v28 }
 0x106   : > { %v294_v57 = vpop.permute.xlu2 %293  ;;  %v564_v32 = vsel %vm84_vm0, %v506_v20, 0.0  ;;  %v518_v28 = vmul.f32 %v1276_v31, %v1260_v45  ;;  %v1353_v34 = vadd.s32 4294967288, %v1349_v21 }
 0x107   : > { %v357_v48 = vmul.f32 %v294_v57, %v1260_v45  ;;  %v576_v7 = vsel %vm84_vm0, %v510_v36, 0.0  ;;  %v573_v25 = vsel %vm84_vm0, %v509_v43, 0.0  ;;  %v579_v30 = vsel %vm84_vm0, %v511_v52, 0.0 }
 0x108   : > { %532 = vadd.xlane.f32.xlu1 %v531_v55 }
 0x109   : > { %598 = vadd.xlane.f32.xlu0 %v597_v10  ;;  %v444_v55 = vsel %vm84_vm0, %v357_v48, 0.0  ;;  %v515_v48 = vmul.f32 %v1263_v46, %v1233_v17  ;;  %v516_v17 = vmul.f32 %v1263_v46, %v1279_v0 }
 0x10b   : > { %v594_v4 = vsel %vm84_vm0, %v516_v17, 0.0 }
 0x10d   : > { %547 = vadd.xlane.f32.xlu2 %v546_v61 }
 0x110   : > { %544 = vadd.xlane.f32.xlu1 %v543_v60  ;;  %v269_v39 = vpop.permute.xlu1 %268  ;;  %v591_v60 = vsel %vm84_vm0, %v515_v48, 0.0  ;;  %v385_v48 = vrot.slane %v1128_v44, 4 }
 0x111   : > { %v353_v6 = vmul.f32 %v269_v39, %v121_v47  ;;  %604 = vadd.xlane.f32.xlu0 %v603_v23  ;;  %v513_v47 = vmul.f32 %v1263_v46, %v1202_v53  ;;  %v476_v39 = vrot.slane %v1171_v16, 7 }
 0x113   : > { %v431_v58 = vsel %vm84_vm0, %v353_v6, 0.0  ;;  %v585_v49 = vsel %vm84_vm0, %v513_v47, 0.0  ;;  %v128_v6 = vld [vmem:[%s1080_s30 + $0xe0] sm:$0xff]  ;;  %v484_v10 = vperm.slane %v476_v39, 0 }
 0x114   : > { %v432_v13 = vadd.f32 %v431_v58, %v430_v5  ;;  %v129_v5 = vld [vmem:[%s1080_s30 + $0xe8] sm:$0xff]  ;;  %v360_v58 = vmul.f32 %v313_v9, %v128_v6  ;;  %v1373_v9 = vadd.s32 4294967280, %v1349_v21 }
 0x115   : > { %556 = vadd.xlane.f32.xlu2 %v555_v12  ;;  %v600_v12 = vsel %vm84_vm0, %v518_v28, 0.0  ;;  %v522_v46 = vmul.f32 %v484_v10, %v129_v5  ;;  %v521_v31 = vmul.f32 %v484_v10, %v128_v6 }
 0x116   : > { %v434_v54 = vadd.f32 %v433_v51, %v432_v13  ;;  %v306_v19 = vpop.permute.xlu2 %305  ;;  %v130_v13 = vld [vmem:[%s1080_s30 + $0xf0] sm:$0xff]  ;;  %v456_v45 = vsel %vm84_vm0, %v360_v58, 0.0 }
 0x117   : > { %v359_v59 = vmul.f32 %v306_v19, %v127_v41  ;;  %v131_v19 = vld [vmem:[%s1080_s30 + $0xf8] sm:$0xff]  ;;  %v523_v23 = vmul.f32 %v484_v10, %v130_v13 }
 0x118   : > { %v1303_v29 = vadd.f32 %v435_v18, %v434_v54  ;;  %553 = vadd.xlane.f32.xlu1 %v552_v50  ;;  %v612_v50 = vsel %vm84_vm0, %v522_v46, 0.0  ;;  %v524_v27 = vmul.f32 %v484_v10, %v131_v19 }
 0x119   : > { %607 = vadd.xlane.f32.xlu0 %v606_v42  ;;  %v448_v2 = vsel %vm84_vm0, %v359_v59, 0.0  ;;  %v615_v38 = vsel %vm84_vm0, %v523_v23, 0.0 }
 0x11d   : > { %565 = vadd.xlane.f32.xlu2 %v564_v32  ;;  %v618_v32 = vsel %vm84_vm0, %v524_v27, 0.0 }
 0x120   : > { %562 = vadd.xlane.f32.xlu1 %v561_v35  ;;  %v288_v40 = vpop.permute.xlu1 %287  ;;  %v530_v35 = vpop.xlane.xlu0 %529 }
 0x121   : > { %v356_v8 = vmul.f32 %v288_v40, %v124_v3  ;;  %v582_v3 = vsel %vm84_vm0, %v512_v62, 0.0  ;;  %v636_v36 = vmul.f32 %v530_v35, %v530_v35 }
 0x123   : > { %v443_v57 = vsel %vm84_vm0, %v356_v8, 0.0  ;;  %v703_v40 = vperm.slane %v636_v36, %v1353_v34 }
 0x124   : > { %v445_v22 = vadd.f32 %v444_v55, %v443_v57  ;;  %v372_v55 = vrot.slane %v1168_v11, 4 }
 0x125   : > { %577 = vadd.xlane.f32.xlu2 %v576_v7 }
 0x126   : > { %v325_v41 = vpop.permute.xlu2 %324  ;;  %v373_v52 = vadd.f32 %v372_v55, %v1168_v11  ;;  %v398_v11 = vrot.slane %v1188_v37, 4 }
 0x127   : > { %v362_v18 = vmul.f32 %v325_v41, %v130_v13 }
 0x128   : > { %574 = vadd.xlane.f32.xlu1 %v573_v25 }
 0x129   : > { %v459_v24 = vsel %vm84_vm0, %v362_v18, 0.0 }
 0x12d   : > { %586 = vadd.xlane.f32.xlu2 %v585_v49 }
 0x130   : > { %580 = vadd.xlane.f32.xlu1 %v579_v30  ;;  %v300_v56 = vpop.permute.xlu1 %299  ;;  %v1365_v30 = vadd.s32 4294967272, %v1349_v21 }
 0x131   : > { %v358_v61 = vmul.f32 %v300_v56, %v126_v26  ;;  %v609_v26 = vsel %vm84_vm0, %v521_v31, 0.0  ;;  %v374_v56 = vrot.slane %v373_v52, 2 }
 0x133   : > { %v446_v53 = vsel %vm84_vm0, %v358_v61, 0.0 }
 0x134   : > { %v447_v63 = vadd.f32 %v446_v53, %v445_v22 }
 0x135   : > { %592 = vadd.xlane.f32.xlu2 %v591_v60 }
 0x136   : > { %v1330_v33 = vadd.f32 %v448_v2, %v447_v63  ;;  %v386_v63 = vadd.f32 %v385_v48, %v1128_v44  ;;  %v375_v2 = vadd.f32 %v374_v56, %v373_v52  ;;  %v399_v44 = vadd.f32 %v398_v11, %v1188_v37 }
 0x138   : > { %583 = vadd.xlane.f32.xlu1 %v582_v3  ;;  %v387_v17 = vrot.slane %v386_v63, 2  ;;  %v376_v39 = vrot.slane %v375_v2, 1 }
 0x13a   : > { %v377_v58 = vadd.f32 %v376_v39, %v375_v2 }
 0x13d   : > { %595 = vadd.xlane.f32.xlu2 %v594_v4 }
 0x140   : > { %601 = vadd.xlane.f32.xlu1 %v600_v12  ;;  %v319_v0 = vpop.permute.xlu1 %318 }
 0x141   : > { %v361_v51 = vmul.f32 %v319_v0, %v129_v5  ;;  %v388_v5 = vadd.f32 %v387_v17, %v386_v63 }
 0x143   : > { %v457_v54 = vsel %vm84_vm0, %v361_v51, 0.0  ;;  %v389_v18 = vrot.slane %v388_v5, 1  ;;  %v400_v51 = vrot.slane %v399_v44, 2 }
 0x144   : > { %v458_v20 = vadd.f32 %v457_v54, %v456_v45  ;;  %v627_v45 = vmul.f32 %v377_v58, %v377_v58  ;;  %v411_v54 = vrot.slane %v1207_v15, 4 }
 0x145   : > { %613 = vadd.xlane.f32.xlu2 %v612_v50 }
 0x146   : > { %v460_v59 = vadd.f32 %v459_v24, %v458_v20  ;;  %v412_v23 = vadd.f32 %v411_v54, %v1207_v15 }
 0x148   : > { %610 = vadd.xlane.f32.xlu1 %v609_v26  ;;  %v390_v26 = vadd.f32 %v389_v18, %v388_v5 }
 0x14c   : > { %v542_v7 = vpop.xlane.xlu0 %541 }
 0x14d   : > { %619 = vadd.xlane.f32.xlu2 %v618_v32  ;;  %v640_v3 = vmul.f32 %v542_v7, %v542_v7  ;;  %v413_v7 = vrot.slane %v412_v23, 2 }
 0x14f   : > { %v715_v4 = vperm.slane %v640_v3, %v1353_v34 }
 0x150   : > { %616 = vadd.xlane.f32.xlu1 %v615_v38  ;;  %v331_v8 = vpop.permute.xlu1 %330  ;;  %v628_v38 = vmul.f32 %v390_v26, %v390_v26 }
 0x151   : > { %v363_v43 = vmul.f32 %v331_v8, %v131_v19 }
 0x153   : > { %v461_v1 = vsel %vm84_vm0, %v363_v43, 0.0 }
 0x154   : > { %v1358_v42 = vadd.f32 %v461_v1, %v460_v59  ;;  %v551_v25 = vpop.xlane.xlu0 %550  ;;  %v401_v59 = vadd.f32 %v400_v51, %v399_v44 }
 0x155   : > { %v643_v8 = vmul.f32 %v551_v25, %v551_v25 }
 0x157   : > { %v721_v15 = vperm.slane %v643_v8, %v1349_v21 }
 0x15c   : > { %v560_v53 = vpop.xlane.xlu0 %559 }
 0x164   : > { %v569_v46 = vpop.xlane.xlu0 %568 }
 0x168   : > { %v527_v57 = vpop.xlane.xlu2 %526 }
 0x169   : > { %v635_v22 = vmul.f32 %v527_v57, %v527_v57 }
 0x16b   : > { %v701_v47 = vperm.slane %v635_v22, %v1349_v21 }
 0x16c   : > { %v572_v36 = vpop.xlane.xlu0 %571 }
 0x16d   : > { %v705_v49 = vsel %vm704_vm1, %v703_v40, %v701_v47  ;;  %v402_v40 = vrot.slane %v401_v59, 1  ;;  %v646_v47 = vmul.f32 %v560_v53, %v560_v53  ;;  %v650_v5 = vmul.f32 %v572_v36, %v572_v36 }
 0x16f   : > { %v726_v63 = vperm.slane %v646_v47, %v1365_v30 }
 0x170   : > { %v536_v61 = vpop.xlane.xlu2 %535 }
 0x171   : > { %v638_v62 = vmul.f32 %v536_v61, %v536_v61  ;;  %v414_v61 = vadd.f32 %v413_v7, %v412_v23 }
 0x173   : > { %v711_v60 = vperm.slane %v638_v62, %v1365_v30  ;;  %v415_v11 = vrot.slane %v414_v61, 1 }
 0x178   : > { %v539_v28 = vpop.xlane.xlu2 %538 }
 0x179   : > { %v639_v6 = vmul.f32 %v539_v28, %v539_v28 }
 0x17b   : > { %v714_v10 = vperm.slane %v639_v6, %v1349_v21  ;;  %v533_v12 = vpop.xlane.xlu1 %532 }
 0x17c   : > { %v637_v13 = vmul.f32 %v533_v12, %v533_v12 }
 0x17d   : > { %v716_v41 = vsel %vm704_vm1, %v715_v4, %v714_v10  ;;  %v649_v4 = vmul.f32 %v569_v46, %v569_v46  ;;  %v590_v10 = vpop.xlane.xlu0 %589  ;;  %v733_v46 = vperm.slane %v650_v5, %v1365_v30  ;;  %v463_v5 = vrot.slane %v1358_v42, 4 }
 0x17e   : > { %v707_v0 = vperm.slane %v637_v13, %v1373_v9 }
 0x17f   : > { %v731_v51 = vperm.slane %v649_v4, %v1373_v9 }
 0x180   : > { %v709_v31 = vsel %vm708_vm2, %v707_v0, %v705_v49  ;;  %v548_v50 = vpop.xlane.xlu2 %547  ;;  %v403_v49 = vadd.f32 %v402_v40, %v401_v59  ;;  %v416_v0 = vadd.f32 %v415_v11, %v414_v61  ;;  %v437_v59 = vrot.slane %v1303_v29, 4 }
 0x181   : > { %v713_v19 = vsel %vm712_vm3, %v711_v60, %v709_v31  ;;  %v642_v20 = vmul.f32 %v548_v50, %v548_v50 }
 0x182   : > { %v771_v37 = vadd.f32 %v713_v19, %v627_v45  ;;  %v629_v3 = vmul.f32 %v403_v49, %v403_v49  ;;  %v424_v45 = vrot.slane %v1257_v14, 4  ;;  %v438_v40 = vadd.f32 %v437_v59, %v1303_v29 }
 0x183   : > { %v545_v24 = vpop.xlane.xlu1 %544  ;;  %v719_v32 = vperm.slane %v642_v20, %v1365_v30  ;;  %v630_v20 = vmul.f32 %v416_v0, %v416_v0 }
 0x184   : > { %v641_v27 = vmul.f32 %v545_v24, %v545_v24  ;;  %v779_v25 = vmul.f32 0.5, %v771_v37  ;;  %v425_v26 = vadd.f32 %v424_v45, %v1257_v14 }
 0x186   : > { %v717_v35 = vperm.slane %v641_v27, %v1373_v9 }
 0x188   : > { %v718_v43 = vsel %vm708_vm2, %v717_v35, %v716_v41  ;;  %v557_v1 = vpop.xlane.xlu2 %556  ;;  %v599_v35 = vpop.xlane.xlu0 %598 }
 0x189   : > { %v720_v55 = vsel %vm712_vm3, %v719_v32, %v718_v43  ;;  %v645_v57 = vmul.f32 %v557_v1, %v557_v1  ;;  %v450_v1 = vrot.slane %v1330_v33, 4 }
 0x18a   : > { %v772_v22 = vadd.f32 %v720_v55, %v628_v38  ;;  %v426_v38 = vrot.slane %v425_v26, 2 }
 0x18b   : > { %v554_v52 = vpop.xlane.xlu1 %553  ;;  %v724_v62 = vperm.slane %v645_v57, %v1373_v9  ;;  %v439_v57 = vrot.slane %v438_v40, 2 }
 0x18c   : > { %v780_v48 = vmul.f32 0.5, %v772_v22  ;;  %v644_v56 = vmul.f32 %v554_v52, %v554_v52  ;;  %v427_v55 = vadd.f32 %v426_v38, %v425_v26  ;;  %v451_v22 = vadd.f32 %v450_v1, %v1330_v33 }
 0x18d   : > { %v440_v49 = vadd.f32 %v439_v57, %v438_v40 }
 0x18e   : > { %v795_v60 = vrot.slane %v780_v48, 7  ;;  %v722_v2 = vperm.slane %v644_v56, %v1353_v34  ;;  %v428_v52 = vrot.slane %v427_v55, 1 }
 0x190   : > { %v797_v17 = vsel %vm796_vm4, %v795_v60, %v779_v25  ;;  %v723_v53 = vsel %vm704_vm1, %v722_v2, %v721_v15  ;;  %v566_v39 = vpop.xlane.xlu2 %565  ;;  %v605_v47 = vpop.xlane.xlu0 %604  ;;  %v429_v29 = vadd.f32 %v428_v52, %v427_v55  ;;  %v441_v25 = vrot.slane %v440_v49, 1 }
 0x191   : > { %v725_v28 = vsel %vm708_vm2, %v724_v62, %v723_v53  ;;  %v648_v6 = vmul.f32 %v566_v39, %v566_v39  ;;  %v452_v62 = vrot.slane %v451_v22, 2  ;;  %v656_v2 = vmul.f32 %v590_v10, %v590_v10 }
 0x192   : > { %v727_v12 = vsel %vm712_vm3, %v726_v63, %v725_v28  ;;  %v631_v28 = vmul.f32 %v429_v29, %v429_v29 }
 0x193   : > { %v773_v58 = vadd.f32 %v727_v12, %v629_v3  ;;  %v563_v44 = vpop.xlane.xlu1 %562  ;;  %v729_v13 = vperm.slane %v648_v6, %v1353_v34  ;;  %v453_v11 = vadd.f32 %v452_v62, %v451_v22  ;;  %v442_v12 = vadd.f32 %v441_v25, %v440_v49 }
 0x194   : > { %v647_v41 = vmul.f32 %v563_v44, %v563_v44 }
 0x195   : > { %v781_v18 = vmul.f32 0.5, %v773_v58  ;;  %v743_v58 = vperm.slane %v656_v2, %v1353_v34  ;;  %v454_v45 = vrot.slane %v453_v11, 1 }
 0x196   : > { %v728_v31 = vperm.slane %v647_v41, %v1349_v21  ;;  %v659_v41 = vmul.f32 %v599_v35, %v599_v35 }
 0x197   : > { %v798_v50 = vrot.slane %v781_v18, 6  ;;  %v455_v40 = vadd.f32 %v454_v45, %v453_v11  ;;  %v622_v45 = vld [vmem:[%s621_s5] sm:$0xff] }
 0x198   : > { %v730_v54 = vsel %vm704_vm1, %v729_v13, %v728_v31  ;;  %v578_v19 = vpop.xlane.xlu2 %577  ;;  %v608_v13 = vpop.xlane.xlu0 %607 }
 0x199   : > { %v732_v37 = vsel %vm708_vm2, %v731_v51, %v730_v54  ;;  %v800_v24 = vsel %vm799_vm5, %v798_v50, %v797_v17  ;;  %v652_v15 = vmul.f32 %v578_v19, %v578_v19  ;;  %v632_v54 = vmul.f32 %v442_v12, %v442_v12 }
 0x19a   : > { %v734_v27 = vsel %vm712_vm3, %v733_v46, %v732_v37  ;;  %v661_v46 = vmul.f32 %v605_v47, %v605_v47  ;;  %v662_v19 = vmul.f32 %v608_v13, %v608_v13  ;;  %v633_v47 = vmul.f32 %v455_v40, %v455_v40 }
 0x19b   : > { %v774_v23 = vadd.f32 %v734_v27, %v630_v20  ;;  %v575_v32 = vpop.xlane.xlu1 %574  ;;  %v736_v60 = vperm.slane %v652_v15, %v1353_v34  ;;  %v464_v20 = vadd.f32 %v463_v5, %v1358_v42  ;;  %v749_v27 = vperm.slane %v659_v41, %v1349_v21 }
 0x19c   : > { %v651_v48 = vmul.f32 %v575_v32, %v575_v32  ;;  %v624_v12 = vmul.f32 %v1171_v16, %v1171_v16 }
 0x19d   : > { %v782_v36 = vmul.f32 0.5, %v774_v23  ;;  %v465_v55 = vrot.slane %v464_v20, 2 }
 0x19e   : > { %v735_v63 = vperm.slane %v651_v48, %v1349_v21 }
 0x19f   : > { %v801_v8 = vrot.slane %v782_v36, 5  ;;  %v752_v36 = vperm.slane %v661_v46, %v1373_v9 }
 0x1a0   : > { %v587_v43 = vpop.xlane.xlu2 %586  ;;  %v737_v4 = vsel %vm704_vm1, %v736_v60, %v735_v63 }
 0x1a1   : > { %v803_v7 = vsel %vm802_vm6, %v801_v8, %v800_v24  ;;  %v655_v3 = vmul.f32 %v587_v43, %v587_v43  ;;  %v754_v43 = vperm.slane %v662_v19, %v1365_v30 }
 0x1a3   : > { %v581_v14 = vpop.xlane.xlu1 %580  ;;  %v742_v44 = vperm.slane %v655_v3, %v1349_v21 }
 0x1a4   : > { %v653_v56 = vmul.f32 %v581_v14, %v581_v14 }
 0x1a5   : > { %v744_v37 = vsel %vm704_vm1, %v743_v58, %v742_v44 }
 0x1a6   : > { %v738_v17 = vperm.slane %v653_v56, %v1373_v9 }
 0x1a8   : > { %v593_v61 = vpop.xlane.xlu2 %592  ;;  %v739_v10 = vsel %vm708_vm2, %v738_v17, %v737_v4  ;;  %v908_v4 = vld [vmem:[%s94_s28] sm:$0xff] }
 0x1a9   : > { %v657_v33 = vmul.f32 %v593_v61, %v593_v61  ;;  %v466_v61 = vadd.f32 %v465_v55, %v464_v20 }
 0x1ab   : > { %v584_v53 = vpop.xlane.xlu1 %583  ;;  %v745_v0 = vperm.slane %v657_v33, %v1373_v9  ;;  %v467_v63 = vrot.slane %v466_v61, 1 }
 0x1ac   : > { %v654_v39 = vmul.f32 %v584_v53, %v584_v53 }
 0x1ad   : > { %v746_v23 = vsel %vm708_vm2, %v745_v0, %v744_v37  ;;  %v468_v11 = vadd.f32 %v467_v63, %v466_v61 }
 0x1ae   : > { %v740_v6 = vperm.slane %v654_v39, %v1365_v30 }
 0x1b0   : > { %v741_v18 = vsel %vm712_vm3, %v740_v6, %v739_v10  ;;  %v596_v51 = vpop.xlane.xlu2 %595  ;;  %v623_v6 = vmul.f32 %v908_v4, %v908_v4  ;;  %v634_v10 = vmul.f32 %v468_v11, %v468_v11 }
 0x1b1   : > { %v775_v31 = vadd.f32 %v741_v18, %v631_v28  ;;  %v658_v50 = vmul.f32 %v596_v51, %v596_v51 }
 0x1b3   : > { %v783_v24 = vmul.f32 0.5, %v775_v31  ;;  %v747_v26 = vperm.slane %v658_v50, %v1365_v30  ;;  %v602_v59 = vpop.xlane.xlu1 %601 }
 0x1b4   : > { %v660_v32 = vmul.f32 %v602_v59, %v602_v59 }
 0x1b5   : > { %v804_v35 = vrot.slane %v783_v24, 4  ;;  %v748_v38 = vsel %vm712_vm3, %v747_v26, %v746_v23 }
 0x1b6   : > { %v776_v8 = vadd.f32 %v748_v38, %v632_v54  ;;  %v750_v42 = vperm.slane %v660_v32, %v1353_v34 }
 0x1b7   : > { %v806_v1 = vsel %vm805_vm7, %v804_v35, %v803_v7 }
 0x1b8   : > { %v784_v57 = vmul.f32 0.5, %v776_v8  ;;  %v751_v14 = vsel %vm704_vm1, %v750_v42, %v749_v27  ;;  %v614_v22 = vpop.xlane.xlu2 %613 }
 0x1b9   : > { %v753_v52 = vsel %vm708_vm2, %v752_v36, %v751_v14  ;;  %v664_v25 = vmul.f32 %v614_v22, %v614_v22 }
 0x1ba   : > { %v807_v49 = vrot.slane %v784_v57, 3  ;;  %v755_v15 = vsel %vm712_vm3, %v754_v43, %v753_v52 }
 0x1bb   : > { %v777_v48 = vadd.f32 %v755_v15, %v633_v47  ;;  %v611_v56 = vpop.xlane.xlu1 %610  ;;  %v757_v53 = vperm.slane %v664_v25, %v1353_v34 }
 0x1bc   : > { %v809_v62 = vsel %vm808_vm8, %v807_v49, %v806_v1  ;;  %v663_v60 = vmul.f32 %v611_v56, %v611_v56 }
 0x1bd   : > { %v785_v29 = vmul.f32 0.5, %v777_v48 }
 0x1be   : > { %v756_v33 = vperm.slane %v663_v60, %v1349_v21  ;;  %v625_v21 = vadd.f32 %v624_v12, %v623_v6 }
 0x1bf   : > { %v810_v7 = vrot.slane %v785_v29, 2 }
 0x1c0   : > { %v620_v2 = vpop.xlane.xlu2 %619  ;;  %v758_v44 = vsel %vm704_vm1, %v757_v53, %v756_v33  ;;  %v626_v18 = vmul.f32 2.0, %v625_v21 }
 0x1c1   : > { %v812_v3 = vsel %vm811_vm9, %v810_v7, %v809_v62  ;;  %v666_v17 = vmul.f32 %v620_v2, %v620_v2 }
 0x1c3   : > { %v617_v39 = vpop.xlane.xlu1 %616  ;;  %v761_v5 = vperm.slane %v666_v17, %v1365_v30 }
 0x1c4   : > { %v665_v28 = vmul.f32 %v617_v39, %v617_v39 }
 0x1c6   : > { %v759_v58 = vperm.slane %v665_v28, %v1373_v9 }
 0x1c8   : > { %v760_v34 = vsel %vm708_vm2, %v759_v58, %v758_v44 }
 0x1c9   : > { %v762_v13 = vsel %vm712_vm3, %v761_v5, %v760_v34 }
 0x1ca   : > { %v778_v41 = vadd.f32 %v762_v13, %v634_v10 }
 0x1cc   : > { %v786_v0 = vmul.f32 0.5, %v778_v41 }
 0x1ce   : > { %v813_v51 = vrot.slane %v786_v0, 1 }
 0x1d0   : > { %v815_v16 = vsel %vm814_vm10, %v813_v51, %v812_v3 }
 0x1d1   : > { %v817_v31 = vadd.f32 %v815_v16, %v626_v18  ;;  %91 = sbr.rel (!%p89_p0) target bundleno = 16 (0x10), region = 66 }
 0x1d3   : > { %v818_v30 = vadd.f32 %v817_v31, %v622_v45 }
 0x1d5   : > { %819 = vst.msk [vmem:[%s621_s5] sm:$0xff] %vm84_vm0, %v818_v30 }
 0x1dc   :  { %v823_v9 = vld [vmem:[#allocation2] sm:$0xff]  ;;  %v824_v46 = vld [vmem:[#allocation2 + $0x8] sm:$0xff] }
 0x1dd   :  { %v826_v50 = vsel %vm84_vm0, %v823_v9, 0.0  ;;  %v827_v54 = vsel %vm84_vm0, %v824_v46, 0.0 }
 0x1de   :  { %v828_v19 = vadd.f32 %v827_v54, %v826_v50 }
 0x1e0   :  { %829 = vadd.xlane.f32.xlu0 %v828_v19 }
 0x253   :  { %v830_v20 = vpop.xlane.xlu0 %829 }
 0x254   :  { %v831_v37 = vrot.slane %v830_v20, 4 }
 0x256   :  { %v832_v24 = vadd.f32 %v831_v37, %v830_v20 }
 0x258   :  { %v833_v26 = vrot.slane %v832_v24, 2 }
 0x25a   :  { %v834_v59 = vadd.f32 %v833_v26, %v832_v24 }
 0x25c   :  { %v835_v27 = vrot.slane %v834_v59, 1 }
 0x25e   :  { %v836_v23 = vadd.f32 %v835_v27, %v834_v59 }
 0x260   :  { %862 = vpush %v836_v23 }
 0x291   :  { %s863_s6 = spop %862 }
 0x292   :  { %v838_v32 = vstv %s863_s6 }
 0x293   :  { %839 = vst [vmem:[%s1454_s3] sm:$0xff] %v838_v32 }
 0x294   :  { %844 = vsyncpa [#allocation4], 1 }
 0x295   :  { %845 = vsyncpa [#allocation6], 1 }

</bundles_post_ra>
